<compile_context>
chip_gen: v6e
topology: v6e:2x2x1
jax: 0.10.0
libtpu: 0.0.40
codegen_flags: <defaults>
</compile_context>

<pallas_src>
import functools

import jax
import jax.numpy as jnp
from jax.experimental import pallas as pl
from jax.experimental.pallas import tpu as pltpu


def _two_tower_kernel(
    u_ref, p_ref, n_ref,
    w1u_ref, b1u_ref, w2u_ref, b2u_ref,
    w1i_ref, b1i_ref, w2i_ref, b2i_ref,
    out_ref, *, eps,
):
  """One batch tile: user MLP + fused pos/neg item MLP on the MXU + cosines."""
  f32 = jnp.float32
  bf16 = jnp.bfloat16

  def mlp(x_bf16, w1_ref, b1_ref, w2_ref, b2_ref):
    # Single-pass bf16 matmuls, f32 accumulation; biases added in f32.
    h = jnp.dot(x_bf16, w1_ref[...], preferred_element_type=f32)
    h = jnp.maximum(h + b1_ref[...], 0.0).astype(bf16)          # ReLU
    o = jnp.dot(h, w2_ref[...], preferred_element_type=f32)
    return o + b2_ref[...]

  tb = u_ref.shape[0]

  u = mlp(u_ref[...], w1u_ref, b1u_ref, w2u_ref, b2u_ref)        # (tb, D) f32

  # Fuse pos/neg through one item-tower pass: longer M dim through the MXU,
  # half the matmul launch/drain count per tile.
  pn = jnp.concatenate([p_ref[...], n_ref[...]], axis=0)         # (2*tb, D) bf16
  item = mlp(pn, w1i_ref, b1i_ref, w2i_ref, b2i_ref)             # (2*tb, D) f32
  p = item[:tb]
  n = item[tb:]

  def inv_norm(x):
    # max(||x||, eps) per-row, matching F.cosine_similarity's clamping.
    nrm = jnp.maximum(jnp.sqrt(jnp.sum(x * x, axis=-1)), eps)
    return pl.reciprocal(nrm, approx=True)

  inv_u = inv_norm(u)                                            # computed once
  inv_p = inv_norm(p)
  inv_n = inv_norm(n)

  pos = jnp.sum(u * p, axis=-1) * inv_u * inv_p                  # (tb,)
  neg = jnp.sum(u * n, axis=-1) * inv_u * inv_n                  # (tb,)

  out_ref[0, :] = pos.astype(out_ref.dtype)                      # lane-dense rows
  out_ref[1, :] = neg.astype(out_ref.dtype)


def _pick_batch_tile(b, cap=1024):
  """Largest multiple-of-128 tile <= cap dividing B with >= 2 grid steps.

  Falls back to the full batch (single block) when B is small or awkward, which
  keeps the (8,128) block constraints trivially satisfied.
  """
  t = cap
  while t >= 128:
    if b % t == 0 and (b // t) >= 2:
      return t
    t //= 2
  return b


def two_tower_forward(user_ids, pos_ids, neg_ids, params, *, eps=1e-8,
                      max_tile_b=1024):
  bf16 = jnp.bfloat16
  # TODO(synk): nn.Embedding row gather is data-dependent; left to XLA's gather.
  u_emb = jnp.take(params["user_table"], user_ids, axis=0).astype(bf16)
  p_emb = jnp.take(params["item_table"], pos_ids, axis=0).astype(bf16)
  n_emb = jnp.take(params["item_table"], neg_ids, axis=0).astype(bf16)

  B, D = u_emb.shape
  H = params["w1u"].shape[1]
  tile_b = _pick_batch_tile(B, max_tile_b)
  assert B % tile_b == 0
  grid = (B // tile_b,)

  emb_spec = pl.BlockSpec((tile_b, D), lambda i: (i, 0))
  out_spec = pl.BlockSpec((2, tile_b), lambda i: (0, i))   # lane-dense output

  def full(shape):  # whole-array block, constant index -> stays resident in VMEM
    return pl.BlockSpec(shape, lambda i: (0, 0))

  kernel = functools.partial(_two_tower_kernel, eps=float(eps))
  w = lambda k: params[k].astype(bf16)  # weights bf16; biases stay f32

  out = pl.pallas_call(
      kernel,
      out_shape=jax.ShapeDtypeStruct((2, B), jnp.float32),
      grid_spec=pltpu.PrefetchScalarGridSpec(
          num_scalar_prefetch=0,
          grid=grid,
          in_specs=[
              emb_spec, emb_spec, emb_spec,
              full((D, H)), full((1, H)), full((H, D)), full((1, D)),   # user MLP
              full((D, H)), full((1, H)), full((H, D)), full((1, D)),   # item MLP
          ],
          out_specs=out_spec,
      ),
      compiler_params=pltpu.CompilerParams(
          # TODO(synk): on v7x use pltpu.CORE_PARALLEL here (2 TCs per chip).
          dimension_semantics=("parallel",),
          vmem_limit_bytes=32 * 1024 * 1024,
      ),
  )(
      u_emb, p_emb, n_emb,
      w("w1u"), params["b1u"], w("w2u"), params["b2u"],
      w("w1i"), params["b1i"], w("w2i"), params["b2i"],
  )
  return out[0], out[1]


def two_tower_ref(user_ids, pos_ids, neg_ids, params, eps=1e-8):
  def mlp(x, w1, b1, w2, b2):
    h = jnp.maximum(jnp.dot(x, w1) + b1, 0.0)
    return jnp.dot(h, w2) + b2

  u = mlp(jnp.take(params["user_table"], user_ids, axis=0),
          params["w1u"], params["b1u"], params["w2u"], params["b2u"])
  p = mlp(jnp.take(params["item_table"], pos_ids, axis=0),
          params["w1i"], params["b1i"], params["w2i"], params["b2i"])
  n = mlp(jnp.take(params["item_table"], neg_ids, axis=0),
          params["w1i"], params["b1i"], params["w2i"], params["b2i"])

  def cosine(x, y):
    nx = jnp.maximum(jnp.sqrt(jnp.sum(x * x, -1)), eps)
    ny = jnp.maximum(jnp.sqrt(jnp.sum(y * y, -1)), eps)
    return jnp.sum(x * y, -1) / (nx * ny)

  return cosine(u, p), cosine(u, n)


if __name__ == "__main__":
  key = jax.random.PRNGKey(0)
  ks = jax.random.split(key, 13)

  B = 8
  user_vocab, item_vocab, D, H = 1000, 1000, 128, 256

  params = dict(
      user_table=jax.random.normal(ks[0], (user_vocab, D), jnp.float32),
      w1u=jax.random.normal(ks[1], (D, H), jnp.float32) * 0.05,
      b1u=jax.random.normal(ks[2], (1, H), jnp.float32) * 0.05,
      w2u=jax.random.normal(ks[3], (H, D), jnp.float32) * 0.05,
      b2u=jax.random.normal(ks[4], (1, D), jnp.float32) * 0.05,
      item_table=jax.random.normal(ks[5], (item_vocab, D), jnp.float32),
      w1i=jax.random.normal(ks[6], (D, H), jnp.float32) * 0.05,
      b1i=jax.random.normal(ks[7], (1, H), jnp.float32) * 0.05,
      w2i=jax.random.normal(ks[8], (H, D), jnp.float32) * 0.05,
      b2i=jax.random.normal(ks[9], (1, D), jnp.float32) * 0.05,
  )
  user = jax.random.randint(ks[10], (B,), 0, user_vocab, dtype=jnp.int32)
  pos_item = jax.random.randint(ks[11], (B,), 0, item_vocab, dtype=jnp.int32)
  neg_item = jax.random.randint(ks[12], (B,), 0, item_vocab, dtype=jnp.int32)

  fwd = jax.jit(two_tower_forward)
  pos_out, neg_out = jax.block_until_ready(fwd(user, pos_item, neg_item, params))

  pos_expect, neg_expect = two_tower_ref(user, pos_item, neg_item, params)

  assert pos_out.shape == (B,) and neg_out.shape == (B,)
  assert jnp.allclose(pos_out, pos_expect, rtol=1e-2, atol=1e-2), (pos_out, pos_expect)
  assert jnp.allclose(neg_out, neg_expect, rtol=1e-2, atol=1e-2), (neg_out, neg_expect)
  print("KERNEL_OK")
</pallas_src>

<mosaic_0001>
module attributes {stable_mosaic.version = 11 : i64} {
  func.func @_two_tower_kernel(%arg0: i32, %arg1: memref<8x128xbf16, #tpu.memory_space<vmem>>, %arg2: memref<8x128xbf16, #tpu.memory_space<vmem>>, %arg3: memref<8x128xbf16, #tpu.memory_space<vmem>>, %arg4: memref<128x256xbf16, #tpu.memory_space<vmem>>, %arg5: memref<1x256xf32, #tpu.memory_space<vmem>>, %arg6: memref<256x128xbf16, #tpu.memory_space<vmem>>, %arg7: memref<1x128xf32, #tpu.memory_space<vmem>>, %arg8: memref<128x256xbf16, #tpu.memory_space<vmem>>, %arg9: memref<1x256xf32, #tpu.memory_space<vmem>>, %arg10: memref<256x128xbf16, #tpu.memory_space<vmem>>, %arg11: memref<1x128xf32, #tpu.memory_space<vmem>>, %arg12: memref<2x8xf32, #tpu.memory_space<vmem>>) attributes {dimension_semantics = [#tpu.dimension_semantics<parallel>], iteration_bounds = array<i64: 1>, scalar_prefetch = 0 : i64, scratch_operands = 0 : i64, tpu.core_type = #tpu.core_type<tc>, window_params = [{transform_indices = @transform_0, window_bounds = array<i64: 8, 128>}, {transform_indices = @transform_1, window_bounds = array<i64: 8, 128>}, {transform_indices = @transform_2, window_bounds = array<i64: 8, 128>}, {pipeline_mode = #tpu.pipeline_mode<synchronous>, transform_indices = @transform_3, window_bounds = array<i64: 128, 256>}, {pipeline_mode = #tpu.pipeline_mode<synchronous>, transform_indices = @transform_4, window_bounds = array<i64: 1, 256>}, {pipeline_mode = #tpu.pipeline_mode<synchronous>, transform_indices = @transform_5, window_bounds = array<i64: 256, 128>}, {pipeline_mode = #tpu.pipeline_mode<synchronous>, transform_indices = @transform_6, window_bounds = array<i64: 1, 128>}, {pipeline_mode = #tpu.pipeline_mode<synchronous>, transform_indices = @transform_7, window_bounds = array<i64: 128, 256>}, {pipeline_mode = #tpu.pipeline_mode<synchronous>, transform_indices = @transform_8, window_bounds = array<i64: 1, 256>}, {pipeline_mode = #tpu.pipeline_mode<synchronous>, transform_indices = @transform_9, window_bounds = array<i64: 256, 128>}, {pipeline_mode = #tpu.pipeline_mode<synchronous>, transform_indices = @transform_10, window_bounds = array<i64: 1, 128>}, {transform_indices = @transform_11, window_bounds = array<i64: 2, 8>}]} {
    %c0 = arith.constant 0 : index
    %c0_0 = arith.constant 0 : index
    %0 = vector.load %arg1[%c0, %c0_0] : memref<8x128xbf16, #tpu.memory_space<vmem>>, vector<8x128xbf16>
    %c0_1 = arith.constant 0 : index
    %c0_2 = arith.constant 0 : index
    %1 = vector.load %arg4[%c0_1, %c0_2] : memref<128x256xbf16, #tpu.memory_space<vmem>>, vector<128x256xbf16>
    %cst = arith.constant dense<0.000000e+00> : vector<8x256xf32>
    %2 = tpu.matmul %0, %1, %cst {dimension_numbers = #tpu.dot_dimension_numbers<[1], [0], [0], [1], [0, 0, 1, 1], [], []>} : vector<8x128xbf16>, vector<128x256xbf16>, vector<8x256xf32> -> vector<8x256xf32>
    %c0_3 = arith.constant 0 : index
    %c0_4 = arith.constant 0 : index
    %3 = vector.load %arg5[%c0_3, %c0_4] : memref<1x256xf32, #tpu.memory_space<vmem>>, vector<1x256xf32>
    %4 = vector.broadcast %3 : vector<1x256xf32> to vector<8x256xf32>
    %5 = arith.addf %2, %4 : vector<8x256xf32>
    %cst_5 = arith.constant 0.000000e+00 : f32
    %6 = vector.broadcast %cst_5 : f32 to vector<8x256xf32>
    %7 = arith.maximumf %5, %6 : vector<8x256xf32>
    %8 = arith.truncf %7 : vector<8x256xf32> to vector<8x256xbf16>
    %c0_6 = arith.constant 0 : index
    %c0_7 = arith.constant 0 : index
    %9 = vector.load %arg6[%c0_6, %c0_7] : memref<256x128xbf16, #tpu.memory_space<vmem>>, vector<256x128xbf16>
    %cst_8 = arith.constant dense<0.000000e+00> : vector<8x128xf32>
    %10 = tpu.matmul %8, %9, %cst_8 {dimension_numbers = #tpu.dot_dimension_numbers<[1], [0], [0], [1], [0, 0, 1, 1], [], []>} : vector<8x256xbf16>, vector<256x128xbf16>, vector<8x128xf32> -> vector<8x128xf32>
    %c0_9 = arith.constant 0 : index
    %c0_10 = arith.constant 0 : index
    %11 = vector.load %arg7[%c0_9, %c0_10] : memref<1x128xf32, #tpu.memory_space<vmem>>, vector<1x128xf32>
    %12 = vector.broadcast %11 : vector<1x128xf32> to vector<8x128xf32>
    %13 = arith.addf %10, %12 : vector<8x128xf32>
    %c0_11 = arith.constant 0 : index
    %c0_12 = arith.constant 0 : index
    %14 = vector.load %arg2[%c0_11, %c0_12] : memref<8x128xbf16, #tpu.memory_space<vmem>>, vector<8x128xbf16>
    %c0_13 = arith.constant 0 : index
    %c0_14 = arith.constant 0 : index
    %15 = vector.load %arg3[%c0_13, %c0_14] : memref<8x128xbf16, #tpu.memory_space<vmem>>, vector<8x128xbf16>
    %16 = tpu.concatenate %14, %15 in 0 : vector<8x128xbf16>, vector<8x128xbf16> -> vector<16x128xbf16>
    %c0_15 = arith.constant 0 : index
    %c0_16 = arith.constant 0 : index
    %17 = vector.load %arg8[%c0_15, %c0_16] : memref<128x256xbf16, #tpu.memory_space<vmem>>, vector<128x256xbf16>
    %cst_17 = arith.constant dense<0.000000e+00> : vector<16x256xf32>
    %18 = tpu.matmul %16, %17, %cst_17 {dimension_numbers = #tpu.dot_dimension_numbers<[1], [0], [0], [1], [0, 0, 1, 1], [], []>} : vector<16x128xbf16>, vector<128x256xbf16>, vector<16x256xf32> -> vector<16x256xf32>
    %c0_18 = arith.constant 0 : index
    %c0_19 = arith.constant 0 : index
    %19 = vector.load %arg9[%c0_18, %c0_19] : memref<1x256xf32, #tpu.memory_space<vmem>>, vector<1x256xf32>
    %20 = vector.broadcast %19 : vector<1x256xf32> to vector<16x256xf32>
    %21 = arith.addf %18, %20 : vector<16x256xf32>
    %cst_20 = arith.constant 0.000000e+00 : f32
    %22 = vector.broadcast %cst_20 : f32 to vector<16x256xf32>
    %23 = arith.maximumf %21, %22 : vector<16x256xf32>
    %24 = arith.truncf %23 : vector<16x256xf32> to vector<16x256xbf16>
    %c0_21 = arith.constant 0 : index
    %c0_22 = arith.constant 0 : index
    %25 = vector.load %arg10[%c0_21, %c0_22] : memref<256x128xbf16, #tpu.memory_space<vmem>>, vector<256x128xbf16>
    %cst_23 = arith.constant dense<0.000000e+00> : vector<16x128xf32>
    %26 = tpu.matmul %24, %25, %cst_23 {dimension_numbers = #tpu.dot_dimension_numbers<[1], [0], [0], [1], [0, 0, 1, 1], [], []>} : vector<16x256xbf16>, vector<256x128xbf16>, vector<16x128xf32> -> vector<16x128xf32>
    %c0_24 = arith.constant 0 : index
    %c0_25 = arith.constant 0 : index
    %27 = vector.load %arg11[%c0_24, %c0_25] : memref<1x128xf32, #tpu.memory_space<vmem>>, vector<1x128xf32>
    %28 = vector.broadcast %27 : vector<1x128xf32> to vector<16x128xf32>
    %29 = arith.addf %26, %28 : vector<16x128xf32>
    %30 = vector.extract_strided_slice %29 {offsets = [0, 0], sizes = [8, 128], strides = [1, 1]} : vector<16x128xf32> to vector<8x128xf32>
    %31 = vector.extract_strided_slice %29 {offsets = [8, 0], sizes = [8, 128], strides = [1, 1]} : vector<16x128xf32> to vector<8x128xf32>
    %32 = arith.mulf %13, %13 : vector<8x128xf32>
    %cst_26 = arith.constant dense<0.000000e+00> : vector<8xf32>
    %33 = vector.multi_reduction <add>, %32, %cst_26 [1] : vector<8x128xf32> to vector<8xf32>
    %34 = math.sqrt %33 : vector<8xf32>
    %cst_27 = arith.constant 9.99999993E-9 : f32
    %35 = vector.broadcast %cst_27 : f32 to vector<8xf32>
    %36 = arith.maximumf %34, %35 : vector<8xf32>
    %37 = tpu.reciprocal %36 {approx = true} : vector<8xf32> -> vector<8xf32>
    %38 = arith.mulf %30, %30 : vector<8x128xf32>
    %cst_28 = arith.constant dense<0.000000e+00> : vector<8xf32>
    %39 = vector.multi_reduction <add>, %38, %cst_28 [1] : vector<8x128xf32> to vector<8xf32>
    %40 = math.sqrt %39 : vector<8xf32>
    %cst_29 = arith.constant 9.99999993E-9 : f32
    %41 = vector.broadcast %cst_29 : f32 to vector<8xf32>
    %42 = arith.maximumf %40, %41 : vector<8xf32>
    %43 = tpu.reciprocal %42 {approx = true} : vector<8xf32> -> vector<8xf32>
    %44 = arith.mulf %31, %31 : vector<8x128xf32>
    %cst_30 = arith.constant dense<0.000000e+00> : vector<8xf32>
    %45 = vector.multi_reduction <add>, %44, %cst_30 [1] : vector<8x128xf32> to vector<8xf32>
    %46 = math.sqrt %45 : vector<8xf32>
    %cst_31 = arith.constant 9.99999993E-9 : f32
    %47 = vector.broadcast %cst_31 : f32 to vector<8xf32>
    %48 = arith.maximumf %46, %47 : vector<8xf32>
    %49 = tpu.reciprocal %48 {approx = true} : vector<8xf32> -> vector<8xf32>
    %50 = arith.mulf %13, %30 : vector<8x128xf32>
    %cst_32 = arith.constant dense<0.000000e+00> : vector<8xf32>
    %51 = vector.multi_reduction <add>, %50, %cst_32 [1] : vector<8x128xf32> to vector<8xf32>
    %52 = arith.mulf %51, %37 : vector<8xf32>
    %53 = arith.mulf %52, %43 : vector<8xf32>
    %54 = arith.mulf %13, %31 : vector<8x128xf32>
    %cst_33 = arith.constant dense<0.000000e+00> : vector<8xf32>
    %55 = vector.multi_reduction <add>, %54, %cst_33 [1] : vector<8x128xf32> to vector<8xf32>
    %56 = arith.mulf %55, %37 : vector<8xf32>
    %57 = arith.mulf %56, %49 : vector<8xf32>
    %c0_34 = arith.constant 0 : index
    %c0_35 = arith.constant 0 : index
    %58 = vector.load %arg12[%c0_34, %c0_35] : memref<2x8xf32, #tpu.memory_space<vmem>>, vector<1x8xf32>
    %59 = vector.shape_cast %58 : vector<1x8xf32> to vector<8xf32>
    %60 = vector.shape_cast %53 : vector<8xf32> to vector<1x8xf32>
    tpu.vector_store %arg12[%c0_34, %c0_35], %60 {strides = array<i32>} : memref<2x8xf32, #tpu.memory_space<vmem>>, vector<1x8xf32>,
    %c1 = arith.constant 1 : index
    %c0_36 = arith.constant 0 : index
    %61 = vector.load %arg12[%c1, %c0_36] : memref<2x8xf32, #tpu.memory_space<vmem>>, vector<1x8xf32>
    %62 = vector.shape_cast %61 : vector<1x8xf32> to vector<8xf32>
    %63 = vector.shape_cast %57 : vector<8xf32> to vector<1x8xf32>
    tpu.vector_store %arg12[%c1, %c0_36], %63 {strides = array<i32>} : memref<2x8xf32, #tpu.memory_space<vmem>>, vector<1x8xf32>,
    return
  }
  func.func @transform_0(%arg0: i32) -> (i32, i32) {
    %c0_i32 = arith.constant 0 : i32
    %c0_i32_0 = arith.constant 0 : i32
    return %arg0, %c0_i32 : i32, i32
  }
  func.func @transform_1(%arg0: i32) -> (i32, i32) {
    %c0_i32 = arith.constant 0 : i32
    %c0_i32_0 = arith.constant 0 : i32
    return %arg0, %c0_i32 : i32, i32
  }
  func.func @transform_2(%arg0: i32) -> (i32, i32) {
    %c0_i32 = arith.constant 0 : i32
    %c0_i32_0 = arith.constant 0 : i32
    return %arg0, %c0_i32 : i32, i32
  }
  func.func @transform_3(%arg0: i32) -> (i32, i32) {
    %c0_i32 = arith.constant 0 : i32
    %c0_i32_0 = arith.constant 0 : i32
    %c0_i32_1 = arith.constant 0 : i32
    return %c0_i32, %c0_i32_0 : i32, i32
  }
  func.func @transform_4(%arg0: i32) -> (i32, i32) {
    %c0_i32 = arith.constant 0 : i32
    %c0_i32_0 = arith.constant 0 : i32
    %c0_i32_1 = arith.constant 0 : i32
    return %c0_i32, %c0_i32_0 : i32, i32
  }
  func.func @transform_5(%arg0: i32) -> (i32, i32) {
    %c0_i32 = arith.constant 0 : i32
    %c0_i32_0 = arith.constant 0 : i32
    %c0_i32_1 = arith.constant 0 : i32
    return %c0_i32, %c0_i32_0 : i32, i32
  }
  func.func @transform_6(%arg0: i32) -> (i32, i32) {
    %c0_i32 = arith.constant 0 : i32
    %c0_i32_0 = arith.constant 0 : i32
    %c0_i32_1 = arith.constant 0 : i32
    return %c0_i32, %c0_i32_0 : i32, i32
  }
  func.func @transform_7(%arg0: i32) -> (i32, i32) {
    %c0_i32 = arith.constant 0 : i32
    %c0_i32_0 = arith.constant 0 : i32
    %c0_i32_1 = arith.constant 0 : i32
    return %c0_i32, %c0_i32_0 : i32, i32
  }
  func.func @transform_8(%arg0: i32) -> (i32, i32) {
    %c0_i32 = arith.constant 0 : i32
    %c0_i32_0 = arith.constant 0 : i32
    %c0_i32_1 = arith.constant 0 : i32
    return %c0_i32, %c0_i32_0 : i32, i32
  }
  func.func @transform_9(%arg0: i32) -> (i32, i32) {
    %c0_i32 = arith.constant 0 : i32
    %c0_i32_0 = arith.constant 0 : i32
    %c0_i32_1 = arith.constant 0 : i32
    return %c0_i32, %c0_i32_0 : i32, i32
  }
  func.func @transform_10(%arg0: i32) -> (i32, i32) {
    %c0_i32 = arith.constant 0 : i32
    %c0_i32_0 = arith.constant 0 : i32
    %c0_i32_1 = arith.constant 0 : i32
    return %c0_i32, %c0_i32_0 : i32, i32
  }
  func.func @transform_11(%arg0: i32) -> (i32, i32) {
    %c0_i32 = arith.constant 0 : i32
    %c0_i32_0 = arith.constant 0 : i32
    return %c0_i32, %arg0 : i32, i32
  }
}

</mosaic_0001>

<bundles_post_ra>
// kernel: two_tower_forward.1
= control target key start
LH: loop header
LB: loop body
LE: loop exit
PB: predicated region body
PF: predicated region fallthrough
CT: control target
= control target key end

     0   :  { %v983_v1 = vmov 0   ;;  %vm373_vm0 = vcmask 1043456   ;;  %v58_v54 = vlaneseq  ;;  %vm765_vm7 = vcmask 57344   ;;  %s1270_s3 = inlined_call_operand.vmem [shape: bf16[128,256], index: 3, kind: input, shape index: {}]   ;;  %s1271_s7 = inlined_call_operand.vmem [shape: bf16[128,256], index: 7, kind: input, shape index: {}]   ;;  %s1272_s5 = inlined_call_operand.vmem [shape: bf16[256,128], index: 5, kind: input, shape index: {}]   ;;  %s1273_s2 = inlined_call_operand.vmem [shape: bf16[8,128], index: 2, kind: input, shape index: {}]   ;;  %s1274_s0 = inlined_call_operand.vmem [shape: bf16[8,128], index: 0, kind: input, shape index: {}]   ;;  %s1275_s1 = inlined_call_operand.vmem [shape: bf16[8,128], index: 1, kind: input, shape index: {}]   ;;  %s1276_s9 = inlined_call_operand.vmem [shape: bf16[256,128], index: 9, kind: input, shape index: {}]   ;;  %s1277_s4 = inlined_call_operand.vmem [shape: f32[1,256], index: 4, kind: input, shape index: {}]   ;;  %s1278_s8 = inlined_call_operand.vmem [shape: f32[1,256], index: 8, kind: input, shape index: {}]   ;;  %s1279_s6 = inlined_call_operand.vmem [shape: f32[1,128], index: 6, kind: input, shape index: {}]   ;;  %s1280_s10 = inlined_call_operand.vmem [shape: f32[1,128], index: 10, kind: input, shape index: {}]   ;;  %s1281_s11 = inlined_call_operand.vmem [shape: f32[2,8], index: 11, kind: output, shape index: {}]  }
   0x1   :  { %v890_v0 = vld [vmem:[%s1270_s3 + $0x74] ss:$8 sps:$4 sm:$0xff]   ;;  %180 = vmatprep.mubr.bf16.mxu0 %v983_v1  ;;  %v892_v2 = vld [vmem:[%s1270_s3 + $0x70] ss:$8 sps:$4 sm:$0xff]   ;;  %v893_v3 = vld [vmem:[%s1270_s3 + $0x64] ss:$8 sps:$4 sm:$0xff]  }
   0x2   :  { %148 = vmatprep.subr.bf16.mxu0 %v890_v0  ;;  %v895_v4 = vld [vmem:[%s1270_s3 + $0x60] ss:$8 sps:$4 sm:$0xff]   ;;  %v896_v5 = vld [vmem:[%s1270_s3 + $0x54] ss:$8 sps:$4 sm:$0xff]   ;;  %v898_v6 = vld [vmem:[%s1270_s3 + $0x50] ss:$8 sps:$4 sm:$0xff]  }
   0x3   :  { %149 = vmatpush1.bf16.msra.mxu0 %v892_v2  ;;  %v899_v7 = vld [vmem:[%s1270_s3 + $0x44] ss:$8 sps:$4 sm:$0xff]   ;;  %v901_v8 = vld [vmem:[%s1270_s3 + $0x40] ss:$8 sps:$4 sm:$0xff]   ;;  %v902_v9 = vld [vmem:[%s1270_s3 + $0x34] ss:$8 sps:$4 sm:$0xff]  }
   0x4   :  { %150 = vmatprep.subr.bf16.mxu0 %v893_v3  ;;  %v904_v10 = vld [vmem:[%s1270_s3 + $0x30] ss:$8 sps:$4 sm:$0xff]   ;;  %v905_v11 = vld [vmem:[%s1270_s3 + $0x24] ss:$8 sps:$4 sm:$0xff]   ;;  %v907_v12 = vld [vmem:[%s1270_s3 + $0x20] ss:$8 sps:$4 sm:$0xff]  }
   0x5   :  { %v908_v13 = vld [vmem:[%s1270_s3 + $0x14] ss:$8 sps:$4 sm:$0xff]   ;;  %v910_v14 = vld [vmem:[%s1270_s3 + $0x10] ss:$8 sps:$4 sm:$0xff]   ;;  %v911_v15 = vld [vmem:[%s1270_s3 + $0x4] ss:$8 sps:$4 sm:$0xff]  }
   0x6   :  { %v939_v16 = vld [vmem:[%s1272_s5 + $0x78] sm:$0xff]   ;;  %v913_v18 = vld [vmem:[%s1270_s3] ss:$8 sps:$4 sm:$0xff]   ;;  %v941_v19 = vld [vmem:[%s1272_s5 + $0x70] sm:$0xff]   ;;  %v1201_v55 = vshrl.u32 %v58_v54, 7 }
   0x7   :  { %151 = vmatpush1.bf16.msra.mxu0 %v895_v4  ;;  %v940_v17 = vld [vmem:[%s1272_s5 + $0x38] sm:$0xff]   ;;  %845 = vmatprep.subr.bf16.mxu1 %v939_v16  ;;  %v942_v20 = vld [vmem:[%s1272_s5 + $0x30] sm:$0xff]   ;;  %v943_v21 = vld [vmem:[%s1272_s5 + $0x68] sm:$0xff]  }
   0x8   :  { %152 = vmatprep.subr.bf16.mxu0 %v896_v5  ;;  %846 = vmatpush3.bf16.msra.mxu1 %v940_v17  ;;  %v916_v22 = vld [vmem:[%s1271_s7 + $0x74] ss:$8 sps:$4 sm:$0xff]   ;;  %v39_v23 = vld [vmem:[%s1274_s0] sm:$0xf]  ;;  %v914_v24 = vld [vmem:[%s1271_s7 + $0x70] ss:$8 sps:$4 sm:$0xff]  }
   0x9   :  { %847 = vmatprep.subr.bf16.mxu1 %v941_v19  ;;  %v944_v25 = vld [vmem:[%s1272_s5 + $0x28] sm:$0xff]   ;;  %v945_v27 = vld [vmem:[%s1272_s5 + $0x60] sm:$0xff]   ;;  %v922_v29 = vld [vmem:[%s1271_s7 + $0x54] ss:$8 sps:$4 sm:$0xff]   ;;  %v60_v56 = vsub.s32 0, %v1201_v55  ;;  %v64_v58 = vsub.s32 1, %v1201_v55 }
   0xa   :  { %v919_v26 = vld [vmem:[%s1271_s7 + $0x64] ss:$8 sps:$4 sm:$0xff]   ;;  %v917_v28 = vld [vmem:[%s1271_s7 + $0x60] ss:$8 sps:$4 sm:$0xff]   ;;  %v947_v31 = vld [vmem:[%s1272_s5 + $0x58] sm:$0xff]  }
   0xb   :  { %153 = vmatpush1.bf16.msra.mxu0 %v898_v6  ;;  %v946_v30 = vld [vmem:[%s1272_s5 + $0x20] sm:$0xff]   ;;  %v948_v32 = vld [vmem:[%s1272_s5 + $0x18] sm:$0xff]   ;;  %v949_v34 = vld [vmem:[%s1272_s5 + $0x50] sm:$0xff]  }
   0xc   :  { %154 = vmatprep.subr.bf16.mxu0 %v899_v7  ;;  %848 = vmatpush3.bf16.msra.mxu1 %v942_v20  ;;  %v920_v33 = vld [vmem:[%s1271_s7 + $0x50] ss:$8 sps:$4 sm:$0xff]   ;;  %v925_v35 = vld [vmem:[%s1271_s7 + $0x44] ss:$8 sps:$4 sm:$0xff]   ;;  %v923_v37 = vld [vmem:[%s1271_s7 + $0x40] ss:$8 sps:$4 sm:$0xff]  }
   0xd   :  { %849 = vmatprep.subr.bf16.mxu1 %v943_v21  ;;  %v950_v36 = vld [vmem:[%s1272_s5 + $0x10] sm:$0xff]   ;;  %v931_v40 = vld [vmem:[%s1271_s7 + $0x24] ss:$8 sps:$4 sm:$0xff]   ;;  %v929_v41 = vld [vmem:[%s1271_s7 + $0x20] ss:$8 sps:$4 sm:$0xff]  }
   0xe   :  { %v928_v38 = vld [vmem:[%s1271_s7 + $0x34] ss:$8 sps:$4 sm:$0xff]   ;;  %v926_v39 = vld [vmem:[%s1271_s7 + $0x30] ss:$8 sps:$4 sm:$0xff]   ;;  %v937_v44 = vld [vmem:[%s1271_s7 + $0x4] ss:$8 sps:$4 sm:$0xff]  }
   0xf   :  { %155 = vmatpush1.bf16.msra.mxu0 %v901_v8  ;;  %v934_v42 = vld [vmem:[%s1271_s7 + $0x14] ss:$8 sps:$4 sm:$0xff]   ;;  %v932_v43 = vld [vmem:[%s1271_s7 + $0x10] ss:$8 sps:$4 sm:$0xff]   ;;  %v935_v45 = vld [vmem:[%s1271_s7] ss:$8 sps:$4 sm:$0xff]  }
  0x10   :  { %156 = vmatprep.subr.bf16.mxu0 %v902_v9  ;;  %850 = vmatpush3.bf16.msra.mxu1 %v944_v25  ;;  %v938_v46 = vld [vmem:[%s1273_s2] ss:$0 sps:$4 sm:$0xff]   ;;  %v951_v49 = vld [vmem:[%s1272_s5 + $0x48] sm:$0xff]   ;;  %v955_v53 = vld [vmem:[%s1276_s9 + $0x78] sm:$0xff]  }
  0x11   :  { %851 = vmatprep.subr.bf16.mxu1 %v945_v27  ;;  %v368_v47 = vld [vmem:[%s1275_s1] sm:$0xf]  ;;  %v952_v50 = vld [vmem:[%s1272_s5 + $0x8] sm:$0xff]   ;;  %v956_v6 = vld [vmem:[%s1276_s9 + $0x38] sm:$0xff]  }
  0x12   :  { %v376_v48 = vsel %vm373_vm0, %v368_v47, %v938_v46  ;;  %v953_v51 = vld [vmem:[%s1272_s5 + $0x40] sm:$0xff]   ;;  %v957_v8 = vld [vmem:[%s1276_s9 + $0x70] sm:$0xff]   ;;  %v968_v20 = vld [vmem:[%s1276_s9 + $0x8] sm:$0xff]  }
  0x13   :  { %157 = vmatpush1.bf16.msra.mxu0 %v904_v10  ;;  %v954_v52 = vld [vmem:[%s1272_s5] sm:$0xff]   ;;  %v958_v9 = vld [vmem:[%s1276_s9 + $0x30] sm:$0xff]   ;;  %v959_v10 = vld [vmem:[%s1276_s9 + $0x68] sm:$0xff]  }
  0x14   :  { %158 = vmatprep.subr.bf16.mxu0 %v905_v11  ;;  %852 = vmatpush3.bf16.msra.mxu1 %v946_v30  ;;  %v56_v57 = vld [vmem:[%s1277_s4] sm:$0x3]  ;;  %v960_v11 = vld [vmem:[%s1276_s9 + $0x28] sm:$0xff]   ;;  %v965_v16 = vld [vmem:[%s1276_s9 + $0x50] sm:$0xff]  }
  0x15   :  { %853 = vmatprep.subr.bf16.mxu1 %v947_v31  ;;  %v61_v59 = vrot.slane %v56_v57, %v60_v56  ;;  %v65_v60 = vrot.slane %v56_v57, %v64_v58  ;;  %v966_v17 = vld [vmem:[%s1276_s9 + $0x10] sm:$0xff]   ;;  %v394_v19 = vld [vmem:[%s1278_s8] sm:$0x3] }
  0x17   :  { %159 = vmatpush1.bf16.msra.mxu0 %v907_v12  ;;  %v961_v12 = vld [vmem:[%s1276_s9 + $0x60] sm:$0xff]  }
  0x18   :  { %160 = vmatprep.subr.bf16.mxu0 %v908_v13  ;;  %854 = vmatpush3.bf16.msra.mxu1 %v948_v32  ;;  %v962_v13 = vld [vmem:[%s1276_s9 + $0x20] sm:$0xff]  }
  0x19   :  { %855 = vmatprep.subr.bf16.mxu1 %v949_v34 }
  0x1b   :  { %161 = vmatpush1.bf16.msra.mxu0 %v910_v14  ;;  %v963_v14 = vld [vmem:[%s1276_s9 + $0x58] sm:$0xff]  }
  0x1c   :  { %162 = vmatprep.subr.bf16.mxu0 %v911_v15  ;;  %856 = vmatpush3.bf16.msra.mxu1 %v950_v36  ;;  %v964_v15 = vld [vmem:[%s1276_s9 + $0x18] sm:$0xff]  }
  0x1d   :  { %857 = vmatprep.subr.bf16.mxu1 %v951_v49 }
  0x1f   :  { %163 = vmatpush1.bf16.msra.mxu0 %v913_v18  ;;  %v967_v18 = vld [vmem:[%s1276_s9 + $0x48] sm:$0xff]  }
  0x20   :  { %486 = vmatprep.subr.bf16.mxu0 %v916_v22  ;;  %858 = vmatpush3.bf16.msra.mxu1 %v952_v50  ;;  %v969_v22 = vld [vmem:[%s1276_s9 + $0x40] sm:$0xff]  }
  0x21   :  { %859 = vmatprep.subr.bf16.mxu1 %v953_v51 }
  0x22   :  { %181 = vmatmul.mubr.bf16.vlgmr.msra.gmra.mxu0 %v39_v23  ;;  %v403_v23 = vrot.slane %v394_v19, %v64_v58 }
  0x23   :  { %487 = vmatpush1.bf16.msra.mxu0 %v914_v24  ;;  %518 = vmatprep.mubr.bf16.mxu0 %v983_v1  ;;  %v399_v24 = vrot.slane %v394_v19, %v60_v56  ;;  %v759_v19 = vand.u32 127, %v58_v54 }
  0x24   :  { %488 = vmatprep.subr.bf16.mxu0 %v919_v26  ;;  %860 = vmatpush3.bf16.msra.mxu1 %v954_v52  ;;  %v970_v26 = vld [vmem:[%s1276_s9] sm:$0xff]  }
  0x25   :  { %867 = vmatprep.subr.bf16.mxu1 %v955_v53 }
  0x27   :  { %489 = vmatpush1.bf16.msra.mxu0 %v917_v28 }
  0x28   :  { %490 = vmatprep.subr.bf16.mxu0 %v922_v29 }
  0x2b   :  { %491 = vmatpush1.bf16.msra.mxu0 %v920_v33 }
  0x2c   :  { %492 = vmatprep.subr.bf16.mxu0 %v925_v35 }
  0x2f   :  { %493 = vmatpush1.bf16.msra.mxu0 %v923_v37 }
  0x30   :  { %494 = vmatprep.subr.bf16.mxu0 %v928_v38 }
  0x33   :  { %495 = vmatpush1.bf16.msra.mxu0 %v926_v39 }
  0x34   :  { %496 = vmatprep.subr.bf16.mxu0 %v931_v40  ;;  %v794_v40 = vld [vmem:[%s1279_s6] ss:$0 sm:$0xff] }
  0x37   :  { %497 = vmatpush1.bf16.msra.mxu0 %v929_v41 }
  0x38   :  { %498 = vmatprep.subr.bf16.mxu0 %v934_v42 }
  0x3b   :  { %499 = vmatpush1.bf16.msra.mxu0 %v932_v43 }
  0x3c   :  { %500 = vmatprep.subr.bf16.mxu0 %v937_v44 }
  0x3f   :  { %501 = vmatpush1.bf16.msra.mxu0 %v935_v45 }
  0x42   :  { %519 = vmatmul.mubr.bf16.vlgmr.msra.gmra.mxu0 %v376_v48  ;;  %v828_v48 = vld [vmem:[%s1280_s10] ss:$0 sm:$0xff] }
  0xe2   :  { %v182_v61 = vpop.f32.mrf.mxu0 }
  0xe3   :  { %v183_v62 = vadd.f32 %v182_v61, %v61_v59 }
  0xe4   :  { %v184_v63 = vpop.f32.mrf.mxu0 }
  0xe5   :  { %v185_v0 = vadd.f32 %v184_v63, %v65_v60  ;;  %v189_v1 = vmax.f32 %v183_v62, 0.0 }
  0xe6   :  { %v186_v2 = vpop.f32.mrf.mxu0 }
  0xe7   :  { %v190_v3 = vmax.f32 %v185_v0, 0.0  ;;  %v191_v7 = vpack.c.bf16 %v189_v1, %v189_v1 }
  0xe8   :  { %v187_v4 = vpop.f32.mrf.mxu0 }
  0xe9   :  { %v192_v5 = vpack.c.bf16 %v190_v3, %v190_v3 }
  0xeb   :  { %360 = vmatprep.mubr.bf16.mxu1 %v192_v5 }
  0xec   :  { %361 = vmatmul.mubr.bf16.vlgmr.msra.gmra.mxu1 %v191_v7 }
  0xed   :  { %868 = vmatpush3.bf16.msra.mxu1 %v956_v6 }
  0xee   :  { %869 = vmatprep.subr.bf16.mxu1 %v957_v8 }
  0xf1   :  { %870 = vmatpush3.bf16.msra.mxu1 %v958_v9 }
  0xf2   :  { %871 = vmatprep.subr.bf16.mxu1 %v959_v10 }
  0xf5   :  { %872 = vmatpush3.bf16.msra.mxu1 %v960_v11 }
  0xf6   :  { %873 = vmatprep.subr.bf16.mxu1 %v961_v12 }
  0xf9   :  { %874 = vmatpush3.bf16.msra.mxu1 %v962_v13 }
  0xfa   :  { %875 = vmatprep.subr.bf16.mxu1 %v963_v14 }
  0xfd   :  { %876 = vmatpush3.bf16.msra.mxu1 %v964_v15 }
  0xfe   :  { %877 = vmatprep.subr.bf16.mxu1 %v965_v16 }
 0x101   :  { %878 = vmatpush3.bf16.msra.mxu1 %v966_v17 }
 0x102   :  { %v520_v21 = vpop.f32.mrf.mxu0  ;;  %879 = vmatprep.subr.bf16.mxu1 %v967_v18 }
 0x103   :  { %v521_v30 = vadd.f32 %v520_v21, %v399_v24 }
 0x104   :  { %v522_v25 = vpop.f32.mrf.mxu0 }
 0x105   :  { %880 = vmatpush3.bf16.msra.mxu1 %v968_v20  ;;  %v523_v28 = vadd.f32 %v522_v25, %v403_v23  ;;  %v529_v36 = vmax.f32 %v521_v30, 0.0 }
 0x106   :  { %v524_v27 = vpop.f32.mrf.mxu0  ;;  %881 = vmatprep.subr.bf16.mxu1 %v969_v22  ;;  %v762_v22 = vsub.s32 %v759_v19, %v1201_v55 }
 0x107   :  { %v525_v29 = vadd.f32 %v524_v27, %v399_v24  ;;  %v530_v34 = vmax.f32 %v523_v28, 0.0 }
 0x108   :  { %v526_v31 = vpop.f32.mrf.mxu0 }
 0x109   :  { %v527_v32 = vadd.f32 %v526_v31, %v403_v23  ;;  %882 = vmatpush3.bf16.msra.mxu1 %v970_v26  ;;  %v531_v33 = vmax.f32 %v525_v29, 0.0 }
 0x10b   :  { %v532_v35 = vmax.f32 %v527_v32, 0.0  ;;  %v533_v38 = vpack.c.bf16 %v531_v33, %v529_v36 }
 0x10d   :  { %v534_v37 = vpack.c.bf16 %v532_v35, %v530_v34 }
 0x10f   :  { %702 = vmatprep.mubr.bf16.mxu1 %v534_v37 }
 0x110   :  { %703 = vmatmul.mubr.bf16.vlgmr.msra.gmra.mxu1 %v533_v38 }
 0x1ac   :  { %v861_v39 = vpop.f32.mrf.mxu1 }
 0x1ae   :  { %v862_v41 = vpop.f32.mrf.mxu1 }
 0x1af   :  { %v863_v42 = vadd.f32 %v862_v41, %v861_v39 }
 0x1b0   :  { %v864_v43 = vpop.f32.mrf.mxu1 }
 0x1b1   :  { %v363_v44 = vadd.f32 %v863_v42, %v794_v40 }
 0x1b2   :  { %v865_v45 = vpop.f32.mrf.mxu1 }
 0x1b3   :  { %v711_v46 = vmul.f32 %v363_v44, %v363_v44 }
 0x1b5   :  { %712 = vadd.xlane.f32.xlu0 %v711_v46 }
 0x1d0   :  { %v883_v47 = vpop.f32.mrf.mxu1 }
 0x1d2   :  { %v884_v49 = vpop.f32.mrf.mxu1 }
 0x1d3   :  { %v885_v50 = vadd.f32 %v884_v49, %v883_v47 }
 0x1d4   :  { %v886_v51 = vpop.f32.mrf.mxu1 }
 0x1d5   :  { %v705_v52 = vadd.f32 %v885_v50, %v828_v48 }
 0x1d6   :  { %v887_v53 = vpop.f32.mrf.mxu1 }
 0x1d7   :  { %v888_v56 = vadd.f32 %v887_v53, %v886_v51  ;;  %v723_v57 = vmul.f32 %v705_v52, %v705_v52  ;;  %v747_v61 = vmul.f32 %v705_v52, %v363_v44 }
 0x1d9   :  { %724 = vadd.xlane.f32.xlu0 %v723_v57  ;;  %v708_v58 = vadd.f32 %v888_v56, %v828_v48 }
 0x1db   :  { %v735_v59 = vmul.f32 %v708_v58, %v708_v58  ;;  %v752_v60 = vmul.f32 %v708_v58, %v363_v44 }
 0x1dd   :  { %736 = vadd.xlane.f32.xlu1 %v735_v59  ;;  %753 = vadd.xlane.f32.xlu0 %v752_v60 }
 0x1e1   :  { %748 = vadd.xlane.f32.xlu1 %v747_v61 }
 0x23e   :  { %v713_v62 = vpop.xlane.xlu0 %712 }
 0x23f   :  { %971 = vrsqrt.f32 %v713_v62  ;;  %vm716_vm1 = vcmp.eq.f32.partialorder %v713_v62, inf  ;;  %v719_v4 = vand.u32 2147483648, %v713_v62  ;;  %vm718_vm2 = vcmp.eq.f32.partialorder %v713_v62, 0.0 }
 0x24c   :  { %v972_v0 = vpop.eup %971 }
 0x24d   :  { %v715_v2 = vmul.f32 %v972_v0, %v713_v62 }
 0x24f   :  { %v717_v3 = vsel %vm716_vm1, %v713_v62, %v715_v2 }
 0x250   :  { %v720_v5 = vsel %vm718_vm2, %v719_v4, %v717_v3 }
 0x251   :  { %v721_v7 = vmax.f32 %v720_v5, 1e-08 }
 0x262   :  { %v725_v63 = vpop.xlane.xlu0 %724 }
 0x263   :  { %973 = vrsqrt.f32 %v725_v63  ;;  %vm728_vm3 = vcmp.eq.f32.partialorder %v725_v63, inf  ;;  %v731_v9 = vand.u32 2147483648, %v725_v63  ;;  %vm730_vm4 = vcmp.eq.f32.partialorder %v725_v63, 0.0 }
 0x266   :  { %v737_v1 = vpop.xlane.xlu1 %736  ;;  %v754_v25 = vpop.xlane.xlu0 %753 }
 0x267   :  { %975 = vrsqrt.f32 %v737_v1  ;;  %vm740_vm5 = vcmp.eq.f32.partialorder %v737_v1, inf  ;;  %v743_v15 = vand.u32 2147483648, %v737_v1  ;;  %vm742_vm6 = vcmp.eq.f32.partialorder %v737_v1, 0.0 }
 0x268   :  { %977 = vrcp.f32 %v721_v7 }
 0x26a   :  { %v749_v20 = vpop.xlane.xlu1 %748 }
 0x270   :  { %v974_v6 = vpop.eup %973 }
 0x271   :  { %v727_v8 = vmul.f32 %v974_v6, %v725_v63 }
 0x273   :  { %v729_v10 = vsel %vm728_vm3, %v725_v63, %v727_v8 }
 0x274   :  { %v976_v11 = vpop.eup %975  ;;  %v732_v12 = vsel %vm730_vm4, %v731_v9, %v729_v10 }
 0x275   :  { %v733_v13 = vmax.f32 %v732_v12, 1e-08  ;;  %v739_v14 = vmul.f32 %v976_v11, %v737_v1  ;;  %v978_v21 = vpop.eup %977 }
 0x276   :  { %v750_v23 = vmul.f32 %v978_v21, %v749_v20  ;;  %v755_v27 = vmul.f32 %v978_v21, %v754_v25 }
 0x277   :  { %979 = vrcp.f32 %v733_v13  ;;  %v741_v16 = vsel %vm740_vm5, %v737_v1, %v739_v14 }
 0x278   :  { %v744_v17 = vsel %vm742_vm6, %v743_v15, %v741_v16 }
 0x279   :  { %v745_v18 = vmax.f32 %v744_v17, 1e-08 }
 0x27b   :  { %981 = vrcp.f32 %v745_v18 }
 0x284   :  { %v980_v24 = vpop.eup %979 }
 0x285   :  { %v751_v26 = vmul.f32 %v980_v24, %v750_v23 }
 0x287   :  { %v763_v28 = vrot.slane %v751_v26, %v762_v22 }
 0x288   :  { %v982_v29 = vpop.eup %981 }
 0x289   :  { %v756_v30 = vmul.f32 %v982_v29, %v755_v27  ;;  %766 = vst.msk [vmem:[%s1281_s11] sm:$0x1] %vm765_vm7, %v763_v28 }
 0x28b   :  { %v771_v31 = vrot.slane %v756_v30, %v762_v22 }
 0x28d   :  { %773 = vst.msk [vmem:[%s1281_s11 + $0x1] sm:$0x1] %vm765_vm7, %v771_v31 }

</bundles_post_ra>
